<compile_context>
chip_gen: v7x
topology: tpu7x:2x2x1
jax: 0.10.0
libtpu: 0.0.40
codegen_flags: <defaults>
</compile_context>

<pallas_src>
import numpy as np

import jax
import jax.numpy as jnp
from jax import lax
from jax.experimental import pallas as pl
from jax.experimental.pallas import tpu as pltpu


# ----------------------------------------------------------------------------
# Model configuration (scaled-down VGG: features cfg = [8,'M',16,'M',32,'M'])
# ----------------------------------------------------------------------------
IN_CH = 3
IMG = 16
CONV_SPEC = ((16, 3, 8), (8, 8, 16), (4, 16, 32))   # per stage: (W_in, C_in, C_out)
KPAD = 64                                            # conv contraction dim (zero-padded)
NPAR = 128                                           # even|odd parity outputs, lane-dense
HIDDEN = 64
NUM_CLASSES = 10
FEAT_C, FEAT_H, FEAT_W = 32, 2, 2                    # feature map after the 3 pools


# ----------------------------------------------------------------------------
# Fused Pallas kernel: whole forward pass, everything VMEM-resident
# ----------------------------------------------------------------------------
def _vgg_fused_kernel(x_ref, wconv_ref, wcls_ref, bias_ref, out_ref,
                      pad2_ref, pad3_ref):
    B = out_ref.shape[0]

    def conv_relu_pool_rows(src_ref, stage, H):
        """3x3 SAME conv + bias + ReLU + 2x2 maxpool on a ((H+2)*B, 64) padded slab.

        src_ref rows: (h+1)*B + b hold input row h; rows 0..B-1 / (H+1)*B.. are
        the zero halo.  Returns mm of shape ((H-1)*B, 64) where
        mm[r] = max(row r, row r+B) of the bias+ReLU'd, horizontally pooled map;
        the pooled row h' is the slab mm[2*h'*B : 2*h'*B + B].
        """
        rows = H * B
        acc = jnp.zeros((rows, NPAR), jnp.float32)
        for kh in range(3):                       # 3 fat (rows, 64) @ (64, 128) matmuls
            acc = acc + jnp.dot(src_ref[kh * B:(kh + H) * B, :],
                                wconv_ref[stage * 3 + kh],
                                preferred_element_type=jnp.float32)
        # horizontal (W) pool: even / odd output columns live in the lane halves
        m = jnp.maximum(acc[:, :NPAR // 2], acc[:, NPAR // 2:])
        # bias + ReLU (commute exactly with the max pooling)
        m = jnp.maximum(m + bias_ref[stage:stage + 1, :], 0.0)
        # vertical (H) pool candidates: rows offset by B
        return jnp.maximum(m[:rows - B, :], m[B:, :])

    # Zero ONLY the halo rows of the stage-2 / stage-3 padded scratches.
    zrow = jnp.zeros((B, KPAD), jnp.float32)
    pad2_ref[0:B, :] = zrow
    pad2_ref[9 * B:10 * B, :] = zrow
    pad3_ref[0:B, :] = zrow
    pad3_ref[5 * B:6 * B, :] = zrow

    # stage 1: 16x16x3 -> pooled 8x8x8, written straight into stage-2's padded slab
    mm1 = conv_relu_pool_rows(x_ref, 0, 16)
    for hp in range(8):
        pad2_ref[(hp + 1) * B:(hp + 2) * B, :] = mm1[2 * hp * B:2 * hp * B + B, :]
    # stage 2: 8x8x8 -> pooled 4x4x16
    mm2 = conv_relu_pool_rows(pad2_ref, 1, 8)
    for hp in range(4):
        pad3_ref[(hp + 1) * B:(hp + 2) * B, :] = mm2[2 * hp * B:2 * hp * B + B, :]
    # stage 3: 4x4x16 -> pooled 2x2x32 (stays in registers, no scratch write)
    mm3 = conv_relu_pool_rows(pad3_ref, 2, 4)

    # Classifier: lane-concat the two feature rows -> (B, 128), then 3 matmuls.
    # The PyTorch NCHW .view(B, -1) flatten order is baked into wcls offline.
    feat = jnp.concatenate([mm3[0:B, :], mm3[2 * B:3 * B, :]], axis=-1)   # (B, 128)
    z = jnp.dot(feat, wcls_ref[0:128, :], preferred_element_type=jnp.float32)
    z = jnp.maximum(z + bias_ref[3:4, :], 0.0)     # ReLU (Dropout = eval identity)
    z = jnp.dot(z, wcls_ref[128:192, :], preferred_element_type=jnp.float32)
    z = jnp.maximum(z + bias_ref[4:5, :], 0.0)     # ReLU (Dropout = eval identity)
    z = jnp.dot(z, wcls_ref[192:256, :], preferred_element_type=jnp.float32)
    z = z + bias_ref[5:6, :]
    out_ref[...] = z[:, :NUM_CLASSES].astype(out_ref.dtype)


def vgg_forward_fused(x_nchw, packed):
    """PyTorch-convention NCHW input -> logits, via one fused grid-less Pallas call."""
    wconv, wcls, bias_all = packed
    B = x_nchw.shape[0]
    # NCHW -> (H, B, W, C) -> (H*B, W*C) row slabs; add the H halo rows and pad
    # the contraction lanes 48 -> 64 once here (tiny XLA pad, fused).
    x_rows = jnp.transpose(x_nchw, (2, 0, 3, 1)).reshape(IMG * B, IMG * IN_CH)
    x_pad = jnp.pad(x_rows, ((B, B), (0, KPAD - IMG * IN_CH)))
    return pl.pallas_call(
        _vgg_fused_kernel,
        out_shape=jax.ShapeDtypeStruct((B, NUM_CLASSES), jnp.float32),
        in_specs=[pl.BlockSpec(memory_space=pltpu.MemorySpace.VMEM)] * 4,
        out_specs=pl.BlockSpec(memory_space=pltpu.MemorySpace.VMEM),
        scratch_shapes=[
            pltpu.VMEM((10 * B, KPAD), jnp.float32),   # stage-2 padded activations
            pltpu.VMEM((6 * B, KPAD), jnp.float32),    # stage-3 padded activations
        ],
    )(x_pad, wconv, wcls, bias_all)


# ----------------------------------------------------------------------------
# Offline parameter packing (numpy, not on the hot path)
# ----------------------------------------------------------------------------
def pack_params(params):
    """PyTorch-layout params (OIHW convs, (Out,In) linears) -> 3 kernel arrays."""
    # Conv weights: per stage/kh one (KPAD, 128) row-Toeplitz weight whose lane
    # halves produce the even / odd output columns (kw taps + W-boundary zeros
    # folded in); K zero-padded to 64 so all stages share one array.
    wconv = np.zeros((9, KPAD, NPAR), np.float32)
    bias_all = np.zeros((6, KPAD), np.float32)
    for s, ((w_oihw, b), (w_in, c_in, c_out)) in enumerate(zip(params["features"],
                                                               CONV_SPEC)):
        w_hwio = np.transpose(np.asarray(w_oihw), (2, 3, 1, 0))   # OIHW -> HWIO
        w_half = w_in // 2
        for kh in range(3):
            for p in (0, 1):                                       # output column parity
                for wp in range(w_half):
                    wo = 2 * wp + p
                    for kw in range(3):
                        wi = wo + kw - 1
                        if 0 <= wi < w_in:                         # W-boundary zeros = omitted
                            wconv[s * 3 + kh,
                                  wi * c_in:(wi + 1) * c_in,
                                  p * 64 + wp * c_out:p * 64 + (wp + 1) * c_out] = w_hwio[kh, kw]
        bias_all[s, :] = np.tile(np.asarray(b), w_half)            # lane = wp*C_out + c

    (w0, b0), (w1, b1), (w2, b2) = params["classifier"]
    # First Linear: permute rows so the NCHW flatten (f = c*4 + h*2 + w) matches
    # the kernel's lane-concatenated feature layout (i = h*64 + w*32 + c).
    w0_io = np.asarray(w0).T                                       # (128, HIDDEN)
    w0_cat = np.zeros((FEAT_H * FEAT_W * FEAT_C, HIDDEN), np.float32)
    for h in range(FEAT_H):
        for w in range(FEAT_W):
            for c in range(FEAT_C):
                w0_cat[h * (FEAT_W * FEAT_C) + w * FEAT_C + c, :] = \
                    w0_io[c * (FEAT_H * FEAT_W) + h * FEAT_W + w, :]
    w2_pad = np.zeros((HIDDEN, HIDDEN), np.float32)
    w2_pad[:, :NUM_CLASSES] = np.asarray(w2).T
    wcls = np.concatenate([w0_cat, np.asarray(w1).T, w2_pad], axis=0)   # (256, 64)
    bias_all[3, :] = np.asarray(b0)
    bias_all[4, :] = np.asarray(b1)
    bias_all[5, :NUM_CLASSES] = np.asarray(b2)
    return (jnp.asarray(wconv), jnp.asarray(wcls), jnp.asarray(bias_all))


# ----------------------------------------------------------------------------
# Parameter init (PyTorch layouts) + pure-JAX reference for correctness
# ----------------------------------------------------------------------------
def init_params(key):
    feats = []
    in_ch = IN_CH
    for (_win, _cin, out_ch) in CONV_SPEC:
        key, kw, kb = jax.random.split(key, 3)
        w = 0.1 * jax.random.normal(kw, (out_ch, in_ch, 3, 3), jnp.float32)  # OIHW
        b = 0.1 * jax.random.normal(kb, (out_ch,), jnp.float32)
        feats.append((w, b))
        in_ch = out_ch
    cls = []
    for d_in, d_out in ((FEAT_C * FEAT_H * FEAT_W, HIDDEN),
                        (HIDDEN, HIDDEN), (HIDDEN, NUM_CLASSES)):
        key, kw, kb = jax.random.split(key, 3)
        w = 0.1 * jax.random.normal(kw, (d_out, d_in), jnp.float32)          # (Out, In)
        b = 0.1 * jax.random.normal(kb, (d_out,), jnp.float32)
        cls.append((w, b))
    return {"features": feats, "classifier": cls}


def ref_forward(x_nchw, params):
    x = x_nchw
    for w, b in params["features"]:
        x = lax.conv_general_dilated(x, w, (1, 1), "SAME",
                                     dimension_numbers=("NCHW", "OIHW", "NCHW"))
        x = jnp.maximum(x + b[None, :, None, None], 0.0)
        x = lax.reduce_window(x, -jnp.inf, lax.max,
                              (1, 1, 2, 2), (1, 1, 2, 2), "VALID")
    x = x.reshape(x.shape[0], -1)                       # PyTorch .view(B, -1) on NCHW
    for i, (w, b) in enumerate(params["classifier"]):
        x = x @ w.T + b
        if i < 2:
            x = jnp.maximum(x, 0.0)
    return x


if __name__ == "__main__":
    key = jax.random.PRNGKey(0)
    pkey, xkey = jax.random.split(key)
    params = init_params(pkey)
    x = jax.random.normal(xkey, (2, IN_CH, IMG, IMG), jnp.float32)   # NCHW, like PyTorch

    packed = pack_params(params)
    fwd = jax.jit(vgg_forward_fused)

    out = fwd(x, packed)
    out = jax.block_until_ready(out)

    ref = ref_forward(x, params)
    assert out.shape == (2, NUM_CLASSES), out.shape
    err = float(jnp.max(jnp.abs(out - ref)))
    assert jnp.allclose(out, ref, atol=5e-3, rtol=5e-3), err
    print("KERNEL_OK")
</pallas_src>

<mosaic_0001>
module attributes {stable_mosaic.version = 11 : i64} {
  func.func @_vgg_fused_kernel(%arg0: memref<36x64xf32, #tpu.memory_space<vmem>>, %arg1: memref<9x64x128xf32, #tpu.memory_space<vmem>>, %arg2: memref<256x64xf32, #tpu.memory_space<vmem>>, %arg3: memref<6x64xf32, #tpu.memory_space<vmem>>, %arg4: memref<2x10xf32, #tpu.memory_space<vmem>>, %arg5: memref<20x64xf32, #tpu.memory_space<vmem>>, %arg6: memref<12x64xf32, #tpu.memory_space<vmem>>) attributes {dimension_semantics = [], scalar_prefetch = 0 : i64, scratch_operands = 2 : i64, tpu.core_type = #tpu.core_type<tc>} {
    %cst = arith.constant 0.000000e+00 : f32
    %0 = vector.broadcast %cst : f32 to vector<2x64xf32>
    %c0 = arith.constant 0 : index
    %c0_0 = arith.constant 0 : index
    %1 = vector.load %arg5[%c0, %c0_0] : memref<20x64xf32, #tpu.memory_space<vmem>>, vector<2x64xf32>
    tpu.vector_store %arg5[%c0, %c0_0], %0 {strides = array<i32>} : memref<20x64xf32, #tpu.memory_space<vmem>>, vector<2x64xf32>,
    %c18 = arith.constant 18 : index
    %c0_1 = arith.constant 0 : index
    %2 = vector.load %arg5[%c18, %c0_1] : memref<20x64xf32, #tpu.memory_space<vmem>>, vector<2x64xf32>
    tpu.vector_store %arg5[%c18, %c0_1], %0 {strides = array<i32>} : memref<20x64xf32, #tpu.memory_space<vmem>>, vector<2x64xf32>,
    %c0_2 = arith.constant 0 : index
    %c0_3 = arith.constant 0 : index
    %3 = vector.load %arg6[%c0_2, %c0_3] : memref<12x64xf32, #tpu.memory_space<vmem>>, vector<2x64xf32>
    tpu.vector_store %arg6[%c0_2, %c0_3], %0 {strides = array<i32>} : memref<12x64xf32, #tpu.memory_space<vmem>>, vector<2x64xf32>,
    %c10 = arith.constant 10 : index
    %c0_4 = arith.constant 0 : index
    %4 = vector.load %arg6[%c10, %c0_4] : memref<12x64xf32, #tpu.memory_space<vmem>>, vector<2x64xf32>
    tpu.vector_store %arg6[%c10, %c0_4], %0 {strides = array<i32>} : memref<12x64xf32, #tpu.memory_space<vmem>>, vector<2x64xf32>,
    %cst_5 = arith.constant 0.000000e+00 : f32
    %5 = vector.broadcast %cst_5 : f32 to vector<32x128xf32>
    %c0_6 = arith.constant 0 : index
    %c0_7 = arith.constant 0 : index
    %6 = vector.load %arg0[%c0_6, %c0_7] : memref<36x64xf32, #tpu.memory_space<vmem>>, vector<32x64xf32>
    %c0_8 = arith.constant 0 : index
    %c0_9 = arith.constant 0 : index
    %c0_10 = arith.constant 0 : index
    %7 = vector.load %arg1[%c0_8, %c0_9, %c0_10] : memref<9x64x128xf32, #tpu.memory_space<vmem>>, vector<1x64x128xf32>
    %8 = vector.shape_cast %7 : vector<1x64x128xf32> to vector<64x128xf32>
    %cst_11 = arith.constant dense<0.000000e+00> : vector<32x128xf32>
    %9 = tpu.matmul %6, %8, %cst_11 {dimension_numbers = #tpu.dot_dimension_numbers<[1], [0], [0], [1], [0, 0, 1, 1], [], []>} : vector<32x64xf32>, vector<64x128xf32>, vector<32x128xf32> -> vector<32x128xf32>
    %10 = arith.addf %5, %9 : vector<32x128xf32>
    %c2 = arith.constant 2 : index
    %c0_12 = arith.constant 0 : index
    %11 = vector.load %arg0[%c2, %c0_12] : memref<36x64xf32, #tpu.memory_space<vmem>>, vector<32x64xf32>
    %c1 = arith.constant 1 : index
    %c0_13 = arith.constant 0 : index
    %c0_14 = arith.constant 0 : index
    %12 = vector.load %arg1[%c1, %c0_13, %c0_14] : memref<9x64x128xf32, #tpu.memory_space<vmem>>, vector<1x64x128xf32>
    %13 = vector.shape_cast %12 : vector<1x64x128xf32> to vector<64x128xf32>
    %cst_15 = arith.constant dense<0.000000e+00> : vector<32x128xf32>
    %14 = tpu.matmul %11, %13, %cst_15 {dimension_numbers = #tpu.dot_dimension_numbers<[1], [0], [0], [1], [0, 0, 1, 1], [], []>} : vector<32x64xf32>, vector<64x128xf32>, vector<32x128xf32> -> vector<32x128xf32>
    %15 = arith.addf %10, %14 : vector<32x128xf32>
    %c4 = arith.constant 4 : index
    %c0_16 = arith.constant 0 : index
    %16 = vector.load %arg0[%c4, %c0_16] : memref<36x64xf32, #tpu.memory_space<vmem>>, vector<32x64xf32>
    %c2_17 = arith.constant 2 : index
    %c0_18 = arith.constant 0 : index
    %c0_19 = arith.constant 0 : index
    %17 = vector.load %arg1[%c2_17, %c0_18, %c0_19] : memref<9x64x128xf32, #tpu.memory_space<vmem>>, vector<1x64x128xf32>
    %18 = vector.shape_cast %17 : vector<1x64x128xf32> to vector<64x128xf32>
    %cst_20 = arith.constant dense<0.000000e+00> : vector<32x128xf32>
    %19 = tpu.matmul %16, %18, %cst_20 {dimension_numbers = #tpu.dot_dimension_numbers<[1], [0], [0], [1], [0, 0, 1, 1], [], []>} : vector<32x64xf32>, vector<64x128xf32>, vector<32x128xf32> -> vector<32x128xf32>
    %20 = arith.addf %15, %19 : vector<32x128xf32>
    %21 = vector.extract_strided_slice %20 {offsets = [0, 0], sizes = [32, 64], strides = [1, 1]} : vector<32x128xf32> to vector<32x64xf32>
    %22 = vector.extract_strided_slice %20 {offsets = [0, 64], sizes = [32, 64], strides = [1, 1]} : vector<32x128xf32> to vector<32x64xf32>
    %23 = arith.maximumf %21, %22 : vector<32x64xf32>
    %c0_21 = arith.constant 0 : index
    %c0_22 = arith.constant 0 : index
    %24 = vector.load %arg3[%c0_21, %c0_22] : memref<6x64xf32, #tpu.memory_space<vmem>>, vector<1x64xf32>
    %25 = vector.broadcast %24 : vector<1x64xf32> to vector<32x64xf32>
    %26 = arith.addf %23, %25 : vector<32x64xf32>
    %cst_23 = arith.constant 0.000000e+00 : f32
    %27 = vector.broadcast %cst_23 : f32 to vector<32x64xf32>
    %28 = arith.maximumf %26, %27 : vector<32x64xf32>
    %29 = vector.extract_strided_slice %28 {offsets = [0, 0], sizes = [30, 64], strides = [1, 1]} : vector<32x64xf32> to vector<30x64xf32>
    %30 = vector.extract_strided_slice %28 {offsets = [2, 0], sizes = [30, 64], strides = [1, 1]} : vector<32x64xf32> to vector<30x64xf32>
    %31 = arith.maximumf %29, %30 : vector<30x64xf32>
    %32 = vector.extract_strided_slice %31 {offsets = [0, 0], sizes = [2, 64], strides = [1, 1]} : vector<30x64xf32> to vector<2x64xf32>
    %c2_24 = arith.constant 2 : index
    %c0_25 = arith.constant 0 : index
    %33 = vector.load %arg5[%c2_24, %c0_25] : memref<20x64xf32, #tpu.memory_space<vmem>>, vector<2x64xf32>
    tpu.vector_store %arg5[%c2_24, %c0_25], %32 {strides = array<i32>} : memref<20x64xf32, #tpu.memory_space<vmem>>, vector<2x64xf32>,
    %34 = vector.extract_strided_slice %31 {offsets = [4, 0], sizes = [2, 64], strides = [1, 1]} : vector<30x64xf32> to vector<2x64xf32>
    %c4_26 = arith.constant 4 : index
    %c0_27 = arith.constant 0 : index
    %35 = vector.load %arg5[%c4_26, %c0_27] : memref<20x64xf32, #tpu.memory_space<vmem>>, vector<2x64xf32>
    tpu.vector_store %arg5[%c4_26, %c0_27], %34 {strides = array<i32>} : memref<20x64xf32, #tpu.memory_space<vmem>>, vector<2x64xf32>,
    %36 = vector.extract_strided_slice %31 {offsets = [8, 0], sizes = [2, 64], strides = [1, 1]} : vector<30x64xf32> to vector<2x64xf32>
    %c6 = arith.constant 6 : index
    %c0_28 = arith.constant 0 : index
    %37 = vector.load %arg5[%c6, %c0_28] : memref<20x64xf32, #tpu.memory_space<vmem>>, vector<2x64xf32>
    tpu.vector_store %arg5[%c6, %c0_28], %36 {strides = array<i32>} : memref<20x64xf32, #tpu.memory_space<vmem>>, vector<2x64xf32>,
    %38 = vector.extract_strided_slice %31 {offsets = [12, 0], sizes = [2, 64], strides = [1, 1]} : vector<30x64xf32> to vector<2x64xf32>
    %c8 = arith.constant 8 : index
    %c0_29 = arith.constant 0 : index
    %39 = vector.load %arg5[%c8, %c0_29] : memref<20x64xf32, #tpu.memory_space<vmem>>, vector<2x64xf32>
    tpu.vector_store %arg5[%c8, %c0_29], %38 {strides = array<i32>} : memref<20x64xf32, #tpu.memory_space<vmem>>, vector<2x64xf32>,
    %40 = vector.extract_strided_slice %31 {offsets = [16, 0], sizes = [2, 64], strides = [1, 1]} : vector<30x64xf32> to vector<2x64xf32>
    %c10_30 = arith.constant 10 : index
    %c0_31 = arith.constant 0 : index
    %41 = vector.load %arg5[%c10_30, %c0_31] : memref<20x64xf32, #tpu.memory_space<vmem>>, vector<2x64xf32>
    tpu.vector_store %arg5[%c10_30, %c0_31], %40 {strides = array<i32>} : memref<20x64xf32, #tpu.memory_space<vmem>>, vector<2x64xf32>,
    %42 = vector.extract_strided_slice %31 {offsets = [20, 0], sizes = [2, 64], strides = [1, 1]} : vector<30x64xf32> to vector<2x64xf32>
    %c12 = arith.constant 12 : index
    %c0_32 = arith.constant 0 : index
    %43 = vector.load %arg5[%c12, %c0_32] : memref<20x64xf32, #tpu.memory_space<vmem>>, vector<2x64xf32>
    tpu.vector_store %arg5[%c12, %c0_32], %42 {strides = array<i32>} : memref<20x64xf32, #tpu.memory_space<vmem>>, vector<2x64xf32>,
    %44 = vector.extract_strided_slice %31 {offsets = [24, 0], sizes = [2, 64], strides = [1, 1]} : vector<30x64xf32> to vector<2x64xf32>
    %c14 = arith.constant 14 : index
    %c0_33 = arith.constant 0 : index
    %45 = vector.load %arg5[%c14, %c0_33] : memref<20x64xf32, #tpu.memory_space<vmem>>, vector<2x64xf32>
    tpu.vector_store %arg5[%c14, %c0_33], %44 {strides = array<i32>} : memref<20x64xf32, #tpu.memory_space<vmem>>, vector<2x64xf32>,
    %46 = vector.extract_strided_slice %31 {offsets = [28, 0], sizes = [2, 64], strides = [1, 1]} : vector<30x64xf32> to vector<2x64xf32>
    %c16 = arith.constant 16 : index
    %c0_34 = arith.constant 0 : index
    %47 = vector.load %arg5[%c16, %c0_34] : memref<20x64xf32, #tpu.memory_space<vmem>>, vector<2x64xf32>
    tpu.vector_store %arg5[%c16, %c0_34], %46 {strides = array<i32>} : memref<20x64xf32, #tpu.memory_space<vmem>>, vector<2x64xf32>,
    %cst_35 = arith.constant 0.000000e+00 : f32
    %48 = vector.broadcast %cst_35 : f32 to vector<16x128xf32>
    %c0_36 = arith.constant 0 : index
    %c0_37 = arith.constant 0 : index
    %49 = vector.load %arg5[%c0_36, %c0_37] : memref<20x64xf32, #tpu.memory_space<vmem>>, vector<16x64xf32>
    %c3 = arith.constant 3 : index
    %c0_38 = arith.constant 0 : index
    %c0_39 = arith.constant 0 : index
    %50 = vector.load %arg1[%c3, %c0_38, %c0_39] : memref<9x64x128xf32, #tpu.memory_space<vmem>>, vector<1x64x128xf32>
    %51 = vector.shape_cast %50 : vector<1x64x128xf32> to vector<64x128xf32>
    %cst_40 = arith.constant dense<0.000000e+00> : vector<16x128xf32>
    %52 = tpu.matmul %49, %51, %cst_40 {dimension_numbers = #tpu.dot_dimension_numbers<[1], [0], [0], [1], [0, 0, 1, 1], [], []>} : vector<16x64xf32>, vector<64x128xf32>, vector<16x128xf32> -> vector<16x128xf32>
    %53 = arith.addf %48, %52 : vector<16x128xf32>
    %c2_41 = arith.constant 2 : index
    %c0_42 = arith.constant 0 : index
    %54 = vector.load %arg5[%c2_41, %c0_42] : memref<20x64xf32, #tpu.memory_space<vmem>>, vector<16x64xf32>
    %c4_43 = arith.constant 4 : index
    %c0_44 = arith.constant 0 : index
    %c0_45 = arith.constant 0 : index
    %55 = vector.load %arg1[%c4_43, %c0_44, %c0_45] : memref<9x64x128xf32, #tpu.memory_space<vmem>>, vector<1x64x128xf32>
    %56 = vector.shape_cast %55 : vector<1x64x128xf32> to vector<64x128xf32>
    %cst_46 = arith.constant dense<0.000000e+00> : vector<16x128xf32>
    %57 = tpu.matmul %54, %56, %cst_46 {dimension_numbers = #tpu.dot_dimension_numbers<[1], [0], [0], [1], [0, 0, 1, 1], [], []>} : vector<16x64xf32>, vector<64x128xf32>, vector<16x128xf32> -> vector<16x128xf32>
    %58 = arith.addf %53, %57 : vector<16x128xf32>
    %c4_47 = arith.constant 4 : index
    %c0_48 = arith.constant 0 : index
    %59 = vector.load %arg5[%c4_47, %c0_48] : memref<20x64xf32, #tpu.memory_space<vmem>>, vector<16x64xf32>
    %c5 = arith.constant 5 : index
    %c0_49 = arith.constant 0 : index
    %c0_50 = arith.constant 0 : index
    %60 = vector.load %arg1[%c5, %c0_49, %c0_50] : memref<9x64x128xf32, #tpu.memory_space<vmem>>, vector<1x64x128xf32>
    %61 = vector.shape_cast %60 : vector<1x64x128xf32> to vector<64x128xf32>
    %cst_51 = arith.constant dense<0.000000e+00> : vector<16x128xf32>
    %62 = tpu.matmul %59, %61, %cst_51 {dimension_numbers = #tpu.dot_dimension_numbers<[1], [0], [0], [1], [0, 0, 1, 1], [], []>} : vector<16x64xf32>, vector<64x128xf32>, vector<16x128xf32> -> vector<16x128xf32>
    %63 = arith.addf %58, %62 : vector<16x128xf32>
    %64 = vector.extract_strided_slice %63 {offsets = [0, 0], sizes = [16, 64], strides = [1, 1]} : vector<16x128xf32> to vector<16x64xf32>
    %65 = vector.extract_strided_slice %63 {offsets = [0, 64], sizes = [16, 64], strides = [1, 1]} : vector<16x128xf32> to vector<16x64xf32>
    %66 = arith.maximumf %64, %65 : vector<16x64xf32>
    %c1_52 = arith.constant 1 : index
    %c0_53 = arith.constant 0 : index
    %67 = vector.load %arg3[%c1_52, %c0_53] : memref<6x64xf32, #tpu.memory_space<vmem>>, vector<1x64xf32>
    %68 = vector.broadcast %67 : vector<1x64xf32> to vector<16x64xf32>
    %69 = arith.addf %66, %68 : vector<16x64xf32>
    %cst_54 = arith.constant 0.000000e+00 : f32
    %70 = vector.broadcast %cst_54 : f32 to vector<16x64xf32>
    %71 = arith.maximumf %69, %70 : vector<16x64xf32>
    %72 = vector.extract_strided_slice %71 {offsets = [0, 0], sizes = [14, 64], strides = [1, 1]} : vector<16x64xf32> to vector<14x64xf32>
    %73 = vector.extract_strided_slice %71 {offsets = [2, 0], sizes = [14, 64], strides = [1, 1]} : vector<16x64xf32> to vector<14x64xf32>
    %74 = arith.maximumf %72, %73 : vector<14x64xf32>
    %75 = vector.extract_strided_slice %74 {offsets = [0, 0], sizes = [2, 64], strides = [1, 1]} : vector<14x64xf32> to vector<2x64xf32>
    %c2_55 = arith.constant 2 : index
    %c0_56 = arith.constant 0 : index
    %76 = vector.load %arg6[%c2_55, %c0_56] : memref<12x64xf32, #tpu.memory_space<vmem>>, vector<2x64xf32>
    tpu.vector_store %arg6[%c2_55, %c0_56], %75 {strides = array<i32>} : memref<12x64xf32, #tpu.memory_space<vmem>>, vector<2x64xf32>,
    %77 = vector.extract_strided_slice %74 {offsets = [4, 0], sizes = [2, 64], strides = [1, 1]} : vector<14x64xf32> to vector<2x64xf32>
    %c4_57 = arith.constant 4 : index
    %c0_58 = arith.constant 0 : index
    %78 = vector.load %arg6[%c4_57, %c0_58] : memref<12x64xf32, #tpu.memory_space<vmem>>, vector<2x64xf32>
    tpu.vector_store %arg6[%c4_57, %c0_58], %77 {strides = array<i32>} : memref<12x64xf32, #tpu.memory_space<vmem>>, vector<2x64xf32>,
    %79 = vector.extract_strided_slice %74 {offsets = [8, 0], sizes = [2, 64], strides = [1, 1]} : vector<14x64xf32> to vector<2x64xf32>
    %c6_59 = arith.constant 6 : index
    %c0_60 = arith.constant 0 : index
    %80 = vector.load %arg6[%c6_59, %c0_60] : memref<12x64xf32, #tpu.memory_space<vmem>>, vector<2x64xf32>
    tpu.vector_store %arg6[%c6_59, %c0_60], %79 {strides = array<i32>} : memref<12x64xf32, #tpu.memory_space<vmem>>, vector<2x64xf32>,
    %81 = vector.extract_strided_slice %74 {offsets = [12, 0], sizes = [2, 64], strides = [1, 1]} : vector<14x64xf32> to vector<2x64xf32>
    %c8_61 = arith.constant 8 : index
    %c0_62 = arith.constant 0 : index
    %82 = vector.load %arg6[%c8_61, %c0_62] : memref<12x64xf32, #tpu.memory_space<vmem>>, vector<2x64xf32>
    tpu.vector_store %arg6[%c8_61, %c0_62], %81 {strides = array<i32>} : memref<12x64xf32, #tpu.memory_space<vmem>>, vector<2x64xf32>,
    %cst_63 = arith.constant 0.000000e+00 : f32
    %83 = vector.broadcast %cst_63 : f32 to vector<8x128xf32>
    %c0_64 = arith.constant 0 : index
    %c0_65 = arith.constant 0 : index
    %84 = vector.load %arg6[%c0_64, %c0_65] : memref<12x64xf32, #tpu.memory_space<vmem>>, vector<8x64xf32>
    %c6_66 = arith.constant 6 : index
    %c0_67 = arith.constant 0 : index
    %c0_68 = arith.constant 0 : index
    %85 = vector.load %arg1[%c6_66, %c0_67, %c0_68] : memref<9x64x128xf32, #tpu.memory_space<vmem>>, vector<1x64x128xf32>
    %86 = vector.shape_cast %85 : vector<1x64x128xf32> to vector<64x128xf32>
    %cst_69 = arith.constant dense<0.000000e+00> : vector<8x128xf32>
    %87 = tpu.matmul %84, %86, %cst_69 {dimension_numbers = #tpu.dot_dimension_numbers<[1], [0], [0], [1], [0, 0, 1, 1], [], []>} : vector<8x64xf32>, vector<64x128xf32>, vector<8x128xf32> -> vector<8x128xf32>
    %88 = arith.addf %83, %87 : vector<8x128xf32>
    %c2_70 = arith.constant 2 : index
    %c0_71 = arith.constant 0 : index
    %89 = vector.load %arg6[%c2_70, %c0_71] : memref<12x64xf32, #tpu.memory_space<vmem>>, vector<8x64xf32>
    %c7 = arith.constant 7 : index
    %c0_72 = arith.constant 0 : index
    %c0_73 = arith.constant 0 : index
    %90 = vector.load %arg1[%c7, %c0_72, %c0_73] : memref<9x64x128xf32, #tpu.memory_space<vmem>>, vector<1x64x128xf32>
    %91 = vector.shape_cast %90 : vector<1x64x128xf32> to vector<64x128xf32>
    %cst_74 = arith.constant dense<0.000000e+00> : vector<8x128xf32>
    %92 = tpu.matmul %89, %91, %cst_74 {dimension_numbers = #tpu.dot_dimension_numbers<[1], [0], [0], [1], [0, 0, 1, 1], [], []>} : vector<8x64xf32>, vector<64x128xf32>, vector<8x128xf32> -> vector<8x128xf32>
    %93 = arith.addf %88, %92 : vector<8x128xf32>
    %c4_75 = arith.constant 4 : index
    %c0_76 = arith.constant 0 : index
    %94 = vector.load %arg6[%c4_75, %c0_76] : memref<12x64xf32, #tpu.memory_space<vmem>>, vector<8x64xf32>
    %c8_77 = arith.constant 8 : index
    %c0_78 = arith.constant 0 : index
    %c0_79 = arith.constant 0 : index
    %95 = vector.load %arg1[%c8_77, %c0_78, %c0_79] : memref<9x64x128xf32, #tpu.memory_space<vmem>>, vector<1x64x128xf32>
    %96 = vector.shape_cast %95 : vector<1x64x128xf32> to vector<64x128xf32>
    %cst_80 = arith.constant dense<0.000000e+00> : vector<8x128xf32>
    %97 = tpu.matmul %94, %96, %cst_80 {dimension_numbers = #tpu.dot_dimension_numbers<[1], [0], [0], [1], [0, 0, 1, 1], [], []>} : vector<8x64xf32>, vector<64x128xf32>, vector<8x128xf32> -> vector<8x128xf32>
    %98 = arith.addf %93, %97 : vector<8x128xf32>
    %99 = vector.extract_strided_slice %98 {offsets = [0, 0], sizes = [8, 64], strides = [1, 1]} : vector<8x128xf32> to vector<8x64xf32>
    %100 = vector.extract_strided_slice %98 {offsets = [0, 64], sizes = [8, 64], strides = [1, 1]} : vector<8x128xf32> to vector<8x64xf32>
    %101 = arith.maximumf %99, %100 : vector<8x64xf32>
    %c2_81 = arith.constant 2 : index
    %c0_82 = arith.constant 0 : index
    %102 = vector.load %arg3[%c2_81, %c0_82] : memref<6x64xf32, #tpu.memory_space<vmem>>, vector<1x64xf32>
    %103 = vector.broadcast %102 : vector<1x64xf32> to vector<8x64xf32>
    %104 = arith.addf %101, %103 : vector<8x64xf32>
    %cst_83 = arith.constant 0.000000e+00 : f32
    %105 = vector.broadcast %cst_83 : f32 to vector<8x64xf32>
    %106 = arith.maximumf %104, %105 : vector<8x64xf32>
    %107 = vector.extract_strided_slice %106 {offsets = [0, 0], sizes = [6, 64], strides = [1, 1]} : vector<8x64xf32> to vector<6x64xf32>
    %108 = vector.extract_strided_slice %106 {offsets = [2, 0], sizes = [6, 64], strides = [1, 1]} : vector<8x64xf32> to vector<6x64xf32>
    %109 = arith.maximumf %107, %108 : vector<6x64xf32>
    %110 = vector.extract_strided_slice %109 {offsets = [0, 0], sizes = [2, 64], strides = [1, 1]} : vector<6x64xf32> to vector<2x64xf32>
    %111 = vector.extract_strided_slice %109 {offsets = [4, 0], sizes = [2, 64], strides = [1, 1]} : vector<6x64xf32> to vector<2x64xf32>
    %112 = tpu.concatenate %110, %111 in 1 : vector<2x64xf32>, vector<2x64xf32> -> vector<2x128xf32>
    %c0_84 = arith.constant 0 : index
    %c0_85 = arith.constant 0 : index
    %113 = vector.load %arg2[%c0_84, %c0_85] : memref<256x64xf32, #tpu.memory_space<vmem>>, vector<128x64xf32>
    %cst_86 = arith.constant dense<0.000000e+00> : vector<2x64xf32>
    %114 = tpu.matmul %112, %113, %cst_86 {dimension_numbers = #tpu.dot_dimension_numbers<[1], [0], [0], [1], [0, 0, 1, 1], [], []>} : vector<2x128xf32>, vector<128x64xf32>, vector<2x64xf32> -> vector<2x64xf32>
    %c3_87 = arith.constant 3 : index
    %c0_88 = arith.constant 0 : index
    %115 = vector.load %arg3[%c3_87, %c0_88] : memref<6x64xf32, #tpu.memory_space<vmem>>, vector<1x64xf32>
    %116 = vector.broadcast %115 : vector<1x64xf32> to vector<2x64xf32>
    %117 = arith.addf %114, %116 : vector<2x64xf32>
    %cst_89 = arith.constant 0.000000e+00 : f32
    %118 = vector.broadcast %cst_89 : f32 to vector<2x64xf32>
    %119 = arith.maximumf %117, %118 : vector<2x64xf32>
    %c128 = arith.constant 128 : index
    %c0_90 = arith.constant 0 : index
    %120 = vector.load %arg2[%c128, %c0_90] : memref<256x64xf32, #tpu.memory_space<vmem>>, vector<64x64xf32>
    %cst_91 = arith.constant dense<0.000000e+00> : vector<2x64xf32>
    %121 = tpu.matmul %119, %120, %cst_91 {dimension_numbers = #tpu.dot_dimension_numbers<[1], [0], [0], [1], [0, 0, 1, 1], [], []>} : vector<2x64xf32>, vector<64x64xf32>, vector<2x64xf32> -> vector<2x64xf32>
    %c4_92 = arith.constant 4 : index
    %c0_93 = arith.constant 0 : index
    %122 = vector.load %arg3[%c4_92, %c0_93] : memref<6x64xf32, #tpu.memory_space<vmem>>, vector<1x64xf32>
    %123 = vector.broadcast %122 : vector<1x64xf32> to vector<2x64xf32>
    %124 = arith.addf %121, %123 : vector<2x64xf32>
    %cst_94 = arith.constant 0.000000e+00 : f32
    %125 = vector.broadcast %cst_94 : f32 to vector<2x64xf32>
    %126 = arith.maximumf %124, %125 : vector<2x64xf32>
    %c192 = arith.constant 192 : index
    %c0_95 = arith.constant 0 : index
    %127 = vector.load %arg2[%c192, %c0_95] : memref<256x64xf32, #tpu.memory_space<vmem>>, vector<64x64xf32>
    %cst_96 = arith.constant dense<0.000000e+00> : vector<2x64xf32>
    %128 = tpu.matmul %126, %127, %cst_96 {dimension_numbers = #tpu.dot_dimension_numbers<[1], [0], [0], [1], [0, 0, 1, 1], [], []>} : vector<2x64xf32>, vector<64x64xf32>, vector<2x64xf32> -> vector<2x64xf32>
    %c5_97 = arith.constant 5 : index
    %c0_98 = arith.constant 0 : index
    %129 = vector.load %arg3[%c5_97, %c0_98] : memref<6x64xf32, #tpu.memory_space<vmem>>, vector<1x64xf32>
    %130 = vector.broadcast %129 : vector<1x64xf32> to vector<2x64xf32>
    %131 = arith.addf %128, %130 : vector<2x64xf32>
    %132 = vector.extract_strided_slice %131 {offsets = [0, 0], sizes = [2, 10], strides = [1, 1]} : vector<2x64xf32> to vector<2x10xf32>
    %c0_99 = arith.constant 0 : index
    %c0_100 = arith.constant 0 : index
    %133 = vector.load %arg4[%c0_99, %c0_100] : memref<2x10xf32, #tpu.memory_space<vmem>>, vector<2x10xf32>
    tpu.vector_store %arg4[%c0_99, %c0_100], %132 {strides = array<i32>} : memref<2x10xf32, #tpu.memory_space<vmem>>, vector<2x10xf32>,
    return
  }
}

</mosaic_0001>

<bundles_post_ra>
// kernel: vgg_forward_fused.1
= control target key start
LH: loop header
LB: loop body
LE: loop exit
PB: predicated region body
PF: predicated region fallthrough
CT: control target
= control target key end

     0   :  { %vm48_vm0 = vcmask 523264   ;;  %s2485_s0 = inlined_call_operand.vmem [shape: f32[36,64], index: 0, kind: input, shape index: {}]   ;;  %s2486_s1 = inlined_call_operand.vmem [shape: f32[9,64,128], index: 1, kind: input, shape index: {}]   ;;  %s2487_s2 = inlined_call_operand.vmem [shape: f32[256,64], index: 2, kind: input, shape index: {}]   ;;  %s2488_s3 = inlined_call_operand.vmem [shape: f32[6,64], index: 3, kind: input, shape index: {}]   ;;  %s2489_s4 = inlined_call_operand.hbm [shape: f32[2,10], index: 4, kind: output, shape index: {}]  }
   0x1   :  { %v1282_v0 = vld [vmem:[%s2486_s1 + $0x40] sm:$0xff]  ;;  %v1283_v1 = vld [vmem:[%s2486_s1 + $0x48] sm:$0xff]  ;;  %v1284_v2 = vld [vmem:[%s2486_s1 + $0x50] sm:$0xff] }
   0x2   :  { %v1756_v3 = vpack.c.bf16 %v1283_v1, %v1282_v0  ;;  %v1285_v4 = vld [vmem:[%s2486_s1 + $0x58] sm:$0xff]  ;;  %v1286_v6 = vld [vmem:[%s2486_s1 + $0x60] sm:$0xff]  ;;  %v1287_v7 = vld [vmem:[%s2486_s1 + $0x68] sm:$0xff] }
   0x3   :  { %v1760_v5 = vpack.c.bf16 %v1285_v4, %v1284_v2  ;;  %v35_v8 = vld [vmem:[%s2485_s0 + $0x2] sm:$0xff]  ;;  %v1764_v9 = vpack.c.bf16 %v1287_v7, %v1286_v6  ;;  %v1288_v10 = vld [vmem:[%s2486_s1 + $0x70] sm:$0xff]  ;;  %v1289_v11 = vld [vmem:[%s2486_s1 + $0x78] sm:$0xff] }
   0x4   :  { %1757 = vmatprep.subr.bf16.mxu0 %v1756_v3  ;;  %1519 = vmatprep.mubr.msk.f32.mxu0 %vm48_vm0, %v35_v8  ;;  %v1768_v12 = vpack.c.bf16 %v1289_v11, %v1288_v10  ;;  %v27_v13 = vld [vmem:[%s2486_s1] sm:$0xff]  ;;  %v28_v14 = vld [vmem:[%s2486_s1 + $0x8] sm:$0xff] }
   0x5   :  { %1759 = vmatpush3.bf16.msra.mxu0 %v1756_v3 }
   0x6   :  { %1761 = vmatprep.subr.bf16.mxu0 %v1760_v5 }
   0x9   :  { %1763 = vmatpush3.bf16.msra.mxu0 %v1760_v5 }
   0xa   :  { %1765 = vmatprep.subr.bf16.mxu0 %v1764_v9 }
   0xd   :  { %1767 = vmatpush3.bf16.msra.mxu0 %v1764_v9 }
   0xe   :  { %9 = vsyncpa [#allocation5], 0  ;;  %1769 = vmatprep.subr.bf16.mxu0 %v1768_v12  ;;  %v1772_v15 = vpack.c.bf16 %v28_v14, %v27_v13  ;;  %v29_v16 = vld [vmem:[%s2486_s1 + $0x10] sm:$0xff]  ;;  %v30_v17 = vld [vmem:[%s2486_s1 + $0x18] sm:$0xff]  ;;  %s1981_s16 = smov 64   ;;  %vm18_vm1 = vcmask 517120  }
   0xf   :  { %v36_v18 = vld [vmem:[%s2485_s0 + $0xa] sm:$0xff]  ;;  %v1776_v19 = vpack.c.bf16 %v30_v17, %v29_v16  ;;  %v37_v20 = vld [vmem:[%s2485_s0 + $0x12] sm:$0xff]  ;;  %v31_v21 = vld [vmem:[%s2486_s1 + $0x20] sm:$0xff]  ;;  %v1982_v61 = vmov 0.0   ;;  %vm394_vm2 = vcmask 1045504   ;;  %vm411_vm3 = vcmask 521220  }
  0x10   :  { %v32_v22 = vld [vmem:[%s2486_s1 + $0x28] sm:$0xff]  ;;  %v38_v23 = vld [vmem:[%s2485_s0 + $0x1a] sm:$0xff]  ;;  %v33_v26 = vld [vmem:[%s2486_s1 + $0x30] sm:$0xff]  ;;  %19 = vst.msk [vmem:[#allocation2] sm:$0x3] %vm18_vm1, %v1982_v61  ;;  %vm1984_vm4 = vmmov 0  }
  0x11   :  { %1771 = vmatpush3.bf16.msra.mxu0 %v1768_v12  ;;  %v1780_v24 = vpack.c.bf16 %v32_v22, %v31_v21  ;;  %v23_v25 = vld [vmem:[%s2485_s0] sm:$0xff]  ;;  %v34_v27 = vld [vmem:[%s2486_s1 + $0x38] sm:$0xff]  ;;  %v1299_v30 = vld [vmem:[%s2486_s1 + $0x88] sm:$0xff]  ;;  %20 = vst.msk [vmem:[#allocation2 + $0x12] sm:$0x3] %vm18_vm1, %v1982_v61  ;;  %s1985_s20 = smov [#allocation4]  }
  0x12   :  { %1773 = vmatprep.subr.bf16.mxu0 %v1772_v15  ;;  %v1784_v28 = vpack.c.bf16 %v34_v27, %v33_v26  ;;  %v1298_v29 = vld [vmem:[%s2486_s1 + $0x80] sm:$0xff]  ;;  %v1300_v32 = vld [vmem:[%s2486_s1 + $0x90] sm:$0xff]  ;;  %v1301_v33 = vld [vmem:[%s2486_s1 + $0x98] sm:$0xff]  ;;  %21 = vst.msk [vmem:[#allocation3] sm:$0x3] %vm18_vm1, %v1982_v61  ;;  %s1274_s21 = sshll.u32 %s1985_s20, 4  ;;  %s1275_s21 = int_to_ptr.vmem [resolvable:$true] %s1274_s21 }
  0x13   :  { %v1788_v31 = vpack.c.bf16 %v1299_v30, %v1298_v29  ;;  %v24_v34 = vld [vmem:[%s2485_s0 + $0x8] sm:$0xff]  ;;  %v1792_v35 = vpack.c.bf16 %v1301_v33, %v1300_v32  ;;  %v25_v36 = vld [vmem:[%s2485_s0 + $0x10] sm:$0xff]  ;;  %v1302_v37 = vld [vmem:[%s2486_s1 + $0xa0] sm:$0xff]  ;;  %22 = vst.msk [vmem:[#allocation3 + $0xa] sm:$0x3] %vm18_vm1, %v1982_v61  ;;  %vm1266_vm5 = vcmask 74752   ;;  %p1962_p1 = scmp.lt.s32.totalorder %s1275_s21, %s1275_s21 }
  0x14   :  { %1520 = vmatmul.mubr.msk.f32.vlgmr.msra.gmra.mrb[0].mxu0 %vm48_vm0, %v36_v18  ;;  %v1303_v38 = vld [vmem:[%s2486_s1 + $0xa8] sm:$0xff]  ;;  %v26_v39 = vld [vmem:[%s2485_s0 + $0x18] sm:$0xff]  ;;  %v1304_v42 = vld [vmem:[%s2486_s1 + $0xb0] sm:$0xff] }
  0x15   :  { %1775 = vmatpush3.bf16.msra.mxu0 %v1772_v15  ;;  %1522 = vmatprep.mubr.msk.f32.mxu0 %vm48_vm0, %v37_v20  ;;  %v1796_v40 = vpack.c.bf16 %v1303_v38, %v1302_v37  ;;  %v243_v41 = vld [vmem:[%s2485_s0 + $0x4] sm:$0xff]  ;;  %v1305_v43 = vld [vmem:[%s2486_s1 + $0xb8] sm:$0xff]  ;;  %v244_v45 = vld [vmem:[%s2485_s0 + $0xc] sm:$0xff] }
  0x16   :  { %1777 = vmatprep.subr.bf16.mxu0 %v1776_v19  ;;  %v1800_v44 = vpack.c.bf16 %v1305_v43, %v1304_v42  ;;  %v245_v46 = vld [vmem:[%s2485_s0 + $0x14] sm:$0xff]  ;;  %v246_v47 = vld [vmem:[%s2485_s0 + $0x1c] sm:$0xff]  ;;  %v1320_v49 = vld [vmem:[%s2486_s1 + $0x108] sm:$0xff] }
  0x17   :  { %v1319_v48 = vld [vmem:[%s2486_s1 + $0x100] sm:$0xff]  ;;  %v1321_v52 = vld [vmem:[%s2486_s1 + $0x110] sm:$0xff]  ;;  %v1322_v53 = vld [vmem:[%s2486_s1 + $0x118] sm:$0xff] }
  0x18   :  { %1523 = vmatmul.mubr.msk.f32.gmra.mrb[2].mxu0 %vm48_vm0, %v38_v23  ;;  %v1804_v50 = vpack.c.bf16 %v1320_v49, %v1319_v48  ;;  %v1808_v55 = vpack.c.bf16 %v1322_v53, %v1321_v52  ;;  %v1323_v57 = vld [vmem:[%s2486_s1 + $0x120] sm:$0xff]  ;;  %v1324_v58 = vld [vmem:[%s2486_s1 + $0x128] sm:$0xff]  ;;  %v1325_v62 = vld [vmem:[%s2486_s1 + $0x130] sm:$0xff] }
  0x19   :  { %1779 = vmatpush3.bf16.msra.mxu0 %v1776_v19  ;;  %1541 = vmatprep.mubr.msk.f32.mxu0 %vm48_vm0, %v23_v25  ;;  %v1812_v60 = vpack.c.bf16 %v1324_v58, %v1323_v57  ;;  %v1326_v63 = vld [vmem:[%s2486_s1 + $0x138] sm:$0xff]  ;;  %v1311_v1 = vld [vmem:[%s2486_s1 + $0xc0] sm:$0xff]  ;;  %v1312_v2 = vld [vmem:[%s2486_s1 + $0xc8] sm:$0xff] }
  0x1a   :  { %1781 = vmatprep.subr.bf16.mxu0 %v1780_v24  ;;  %1805 = vmatprep.subr.bf16.mxu1 %v1804_v50  ;;  %v1816_v0 = vpack.c.bf16 %v1326_v63, %v1325_v62  ;;  %v1820_v3 = vpack.c.bf16 %v1312_v2, %v1311_v1  ;;  %v1310_v4 = vld [vmem:[%s2488_s3] ss:$0 sm:$0xff]  ;;  %v1313_v33 = vld [vmem:[%s2486_s1 + $0xd0] sm:$0xff]  ;;  %v1316_v38 = vld [vmem:[%s2486_s1 + $0xe8] sm:$0xff]  ;;  %v1983_v63 = vmov 0.0|0.0  }
  0x1b   :  { %1807 = vmatpush3.bf16.msra.mxu1 %v1804_v50  ;;  %v1315_v37 = vld [vmem:[%s2486_s1 + $0xe0] sm:$0xff]  ;;  %v1318_v42 = vld [vmem:[%s2486_s1 + $0xf8] sm:$0xff]  ;;  %v1336_v52 = vld [vmem:[%s2486_s1 + $0x168] sm:$0xff] }
  0x1c   :  { %1809 = vmatprep.subr.bf16.mxu1 %v1808_v55  ;;  %v1334_v48 = vld [vmem:[%s2486_s1 + $0x158] sm:$0xff] }
  0x1d   :  { %1783 = vmatpush3.bf16.msra.mxu0 %v1780_v24  ;;  %v1353_v1 = vld [vmem:[%s2486_s1 + $0x1d8] sm:$0xff] }
  0x1e   :  { %1785 = vmatprep.subr.bf16.mxu0 %v1784_v28 }
  0x1f   :  { %1811 = vmatpush3.bf16.msra.mxu1 %v1808_v55  ;;  %v1337_v55 = vld [vmem:[%s2486_s1 + $0x170] sm:$0xff] }
  0x20   :  { %1813 = vmatprep.subr.bf16.mxu1 %v1812_v60 }
  0x21   :  { %1787 = vmatpush3.bf16.msra.mxu0 %v1784_v28 }
  0x22   :  { %1789 = vmatprep.subr.bf16.mxu0 %v1788_v31 }
  0x23   :  { %1815 = vmatpush3.bf16.msra.mxu1 %v1812_v60  ;;  %v1351_v60 = vld [vmem:[%s2486_s1 + $0x1c8] sm:$0xff] }
  0x24   :  { %1542 = vmatmul.mubr.msk.f32.vlgmr.msra.gmra.mrb[0].mxu0 %vm48_vm0, %v24_v34  ;;  %1817 = vmatprep.subr.bf16.mxu1 %v1816_v0  ;;  %v1314_v34 = vld [vmem:[%s2486_s1 + $0xd8] sm:$0xff] }
  0x25   :  { %1791 = vmatpush3.bf16.msra.mxu0 %v1788_v31  ;;  %1544 = vmatprep.mubr.msk.f32.mxu0 %vm48_vm0, %v25_v36 }
  0x26   :  { %1793 = vmatprep.subr.bf16.mxu0 %v1792_v35 }
  0x27   :  { %1819 = vmatpush3.bf16.msra.mxu1 %v1816_v0  ;;  %v1352_v0 = vld [vmem:[%s2486_s1 + $0x1d0] sm:$0xff] }
  0x28   :  { %1545 = vmatmul.mubr.msk.f32.gmra.mrb[2].mxu0 %vm48_vm0, %v26_v39  ;;  %1821 = vmatprep.subr.bf16.mxu1 %v1820_v3  ;;  %v1856_v2 = vpack.c.bf16 %v1353_v1, %v1352_v0  ;;  %v1007_v1 = vld [vmem:[%s2487_s2 + $0x30] sm:$0xff] }
  0x29   :  { %1795 = vmatpush3.bf16.msra.mxu0 %v1792_v35  ;;  %1563 = vmatprep.mubr.msk.f32.mxu0 %vm48_vm0, %v243_v41  ;;  %v1824_v35 = vpack.c.bf16 %v1314_v34, %v1313_v33  ;;  %v1317_v41 = vld [vmem:[%s2486_s1 + $0xf0] sm:$0xff]  ;;  %v1347_v33 = vld [vmem:[%s2486_s1 + $0x1a8] sm:$0xff] }
  0x2a   :  { %1797 = vmatprep.subr.bf16.mxu0 %v1796_v40  ;;  %v1832_v43 = vpack.c.bf16 %v1318_v42, %v1317_v41  ;;  %v1362_v41 = vld [vmem:[%s2486_s1 + $0x210] sm:$0xff]  ;;  %v1363_v42 = vld [vmem:[%s2486_s1 + $0x218] sm:$0xff] }
  0x2d   :  { %1799 = vmatpush3.bf16.msra.mxu0 %v1796_v40  ;;  %v1828_v40 = vpack.c.bf16 %v1316_v38, %v1315_v37  ;;  %v1360_v38 = vld [vmem:[%s2486_s1 + $0x200] sm:$0xff] }
  0x2e   :  { %1801 = vmatprep.subr.bf16.mxu0 %v1800_v44 }
  0x31   :  { %1803 = vmatpush3.bf16.msra.mxu0 %v1800_v44  ;;  %v1331_v44 = vld [vmem:[%s2486_s1 + $0x140] sm:$0xff] }
  0x32   :  { %1852 = vmatprep.subr.bf16.mxu0 %v1983_v63 }
  0x34   :  { %1564 = vmatmul.mubr.msk.f32.vlgmr.msra.gmra.mrb[0].mxu0 %vm48_vm0, %v244_v45  ;;  %v1332_v45 = vld [vmem:[%s2486_s1 + $0x148] sm:$0xff] }
  0x35   :  { %1566 = vmatprep.mubr.msk.f32.mxu0 %vm48_vm0, %v245_v46  ;;  %v1836_v46 = vpack.c.bf16 %v1332_v45, %v1331_v44  ;;  %v1880_v44 = vpack.c.bf16 %v1363_v42, %v1362_v41  ;;  %v1364_v45 = vld [vmem:[%s2486_s1 + $0x220] sm:$0xff]  ;;  %v1183_v41 = vld [vmem:[%s2487_s2 + $0xd8] sm:$0xff] }
  0x38   :  { %1567 = vmatmul.mubr.msk.f32.gmra.mrb[2].mxu0 %vm48_vm0, %v246_v47  ;;  %v1333_v47 = vld [vmem:[%s2486_s1 + $0x150] sm:$0xff] }
  0x39   :  { %v1840_v49 = vpack.c.bf16 %v1334_v48, %v1333_v47  ;;  %1642 = vmatprep.mubr.msk.f32.mxu0 %vm1984_vm4, %v1982_v61  ;;  %v1366_v48 = vld [vmem:[%s2486_s1 + $0x230] sm:$0xff] }
 0x107   :  { %v1565_v51 = vpop.f32.mrb[0].mxu0 }
 0x108   :  { %v334_v54 = vpop.f32.mrb[1].mxu0 }
 0x109   :  { %361 = vrot.lane.b32.xlu0 %v334_v54, %s1981_s16 }
 0x10b   :  { %v1568_v56 = vpop.f32.mrb[2].mxu0 }
 0x10c   :  { %v344_v59 = vpop.f32.mrb[3].mxu0 }
 0x10d   :  { %363 = vrot.lane.b32.xlu0 %v1565_v51, %s1981_s16  ;;  %365 = vrot.lane.b32.xlu1 %v344_v59, %s1981_s16 }
 0x111   :  { %367 = vrot.lane.b32.xlu1 %v1568_v56, %s1981_s16 }
 0x17b   :  { %v362_v5 = vpop.permute.xlu0 %361 }
 0x17c   :  { %v373_v6 = vmax.f32 %v334_v54, %v362_v5 }
 0x17e   :  { %v382_v7 = vadd.f32 %v1310_v4, %v373_v6 }
 0x17f   :  { %v364_v8 = vpop.permute.xlu0 %363  ;;  %v366_v9 = vpop.permute.xlu1 %365 }
 0x180   :  { %v374_v10 = vmax.f32 %v1565_v51, %v364_v8  ;;  %v375_v11 = vmax.f32 %v344_v59, %v366_v9  ;;  %v386_v12 = vmax.f32 %v382_v7, 0.0  ;;  %v1335_v51 = vld [vmem:[%s2486_s1 + $0x160] sm:$0xff]  ;;  %v1356_v7 = vld [vmem:[%s2486_s1 + $0x1f0] sm:$0xff]  ;;  %v1357_v8 = vld [vmem:[%s2486_s1 + $0x1f8] sm:$0xff] }
 0x181   :  { %v1844_v54 = vpack.c.bf16 %v1336_v52, %v1335_v51  ;;  %v1350_v59 = vld [vmem:[%s2486_s1 + $0x1c0] sm:$0xff] }
 0x182   :  { %v383_v13 = vadd.f32 %v1310_v4, %v374_v10  ;;  %v384_v14 = vadd.f32 %v1310_v4, %v375_v11  ;;  %v395_v19 = vrot.slane %v386_v12, 2  ;;  %v1853_v62 = vpack.c.bf16 %v1351_v60, %v1350_v59  ;;  %v1341_v11 = vld [vmem:[%s2488_s3 + $0x1] ss:$0 sm:$0xff] }
 0x183   :  { %v368_v15 = vpop.permute.xlu1 %367  ;;  %v1862_v10 = vpack.c.bf16 %v1357_v8, %v1356_v7  ;;  %v1005_v60 = vld [vmem:[%s2487_s2 + $0x20] sm:$0xff]  ;;  %v1011_v7 = vld [vmem:[%s2487_s2 + $0x50] sm:$0xff]  ;;  %v1012_v8 = vld [vmem:[%s2487_s2 + $0x58] sm:$0xff] }
 0x184   :  { %v387_v16 = vmax.f32 %v383_v13, 0.0  ;;  %v388_v17 = vmax.f32 %v384_v14, 0.0  ;;  %v376_v18 = vmax.f32 %v1568_v56, %v368_v15  ;;  %v1338_v56 = vld [vmem:[%s2486_s1 + $0x178] sm:$0xff]  ;;  %1854 = vmatpush3.bf16.msra.mxu0 %v1853_v62  ;;  %v1006_v62 = vld [vmem:[%s2487_s2 + $0x28] sm:$0xff] }
 0x185   :  { %v1848_v57 = vpack.c.bf16 %v1338_v56, %v1337_v55  ;;  %1855 = vmatprep.subr.bf16.mxu0 %v1983_v63  ;;  %v1003_v55 = vld [vmem:[%s2487_s2 + $0x10] sm:$0xff]  ;;  %v1895_v0 = vpack.c.bf16 %v1006_v62, %v1005_v60 }
 0x186   :  { %v396_v20 = vrot.slane %v387_v16, 2  ;;  %v398_v21 = vrot.slane %v388_v17, 2  ;;  %v385_v22 = vadd.f32 %v1310_v4, %v376_v18  ;;  %v1355_v4 = vld [vmem:[%s2486_s1 + $0x1e8] sm:$0xff] }
 0x188   :  { %v397_v23 = vsel %vm394_vm2, %v395_v19, %v396_v20  ;;  %v399_v24 = vsel %vm394_vm2, %v396_v20, %v398_v21  ;;  %v389_v25 = vmax.f32 %v385_v22, 0.0  ;;  %1857 = vmatpush3.bf16.msra.mxu0 %v1856_v2  ;;  %v1008_v2 = vld [vmem:[%s2487_s2 + $0x38] sm:$0xff] }
 0x189   :  { %v406_v26 = vmax.f32 %v386_v12, %v397_v23  ;;  %v407_v27 = vmax.f32 %v387_v16, %v399_v24  ;;  %1858 = vmatprep.subr.bf16.mxu0 %v1983_v63 }
 0x18a   :  { %v400_v28 = vrot.slane %v389_v25, 2 }
 0x18b   :  { %410 = vst.msk [vmem:[#allocation2 + $0x2] sm:$0x3] %vm18_vm1, %v406_v26  ;;  %413 = vst.msk [vmem:[#allocation2 + $0x6] sm:$0x3] %vm18_vm1, %v407_v27 }
 0x18c   :  { %412 = vst.msk [vmem:[#allocation2] sm:$0x30] %vm411_vm3, %v406_v26  ;;  %414 = vst.msk [vmem:[#allocation2 + $0x4] sm:$0x30] %vm411_vm3, %v407_v27  ;;  %v401_v29 = vsel %vm394_vm2, %v398_v21, %v400_v28  ;;  %v409_v30 = vmax.f32 %v389_v25, %v400_v28  ;;  %v1342_v25 = vld [vmem:[%s2486_s1 + $0x180] sm:$0xff]  ;;  %v1343_v26 = vld [vmem:[%s2486_s1 + $0x188] sm:$0xff] }
 0x18d   :  { %v408_v31 = vmax.f32 %v388_v17, %v401_v29  ;;  %v1865_v27 = vpack.c.bf16 %v1343_v26, %v1342_v25  ;;  %v1344_v28 = vld [vmem:[%s2486_s1 + $0x190] sm:$0xff]  ;;  %v1345_v29 = vld [vmem:[%s2486_s1 + $0x198] sm:$0xff]  ;;  %v1094_v25 = vld [vmem:[%s2487_s2 + $0x88] sm:$0xff] }
 0x18e   :  { %417 = vst.msk [vmem:[#allocation2 + $0xe] sm:$0x3] %vm18_vm1, %v409_v30 }
 0x18f   :  { %418 = vst.msk [vmem:[#allocation2 + $0xc] sm:$0x30] %vm411_vm3, %v409_v30  ;;  %416 = vst.msk [vmem:[#allocation2 + $0x8] sm:$0x30] %vm411_vm3, %v408_v31 }
 0x190   :  { %415 = vst.msk [vmem:[#allocation2 + $0xa] sm:$0x3] %vm18_vm1, %v408_v31  ;;  %v1868_v31 = vpack.c.bf16 %v1345_v29, %v1344_v28  ;;  %v1095_v28 = vld [vmem:[%s2487_s2 + $0x90] sm:$0xff]  ;;  %v1096_v29 = vld [vmem:[%s2487_s2 + $0x98] sm:$0xff] }
 0x193   :  { %v430_v32 = vld [vmem:[#allocation2 + $0x2] sm:$0xff] }
 0x194   :  { %1585 = vmatprep.mubr.msk.f32.mxu1 %vm48_vm0, %v430_v32  ;;  %v419_v39 = vld [vmem:[#allocation2] sm:$0xff] }
 0x195   :  { %v1346_v32 = vld [vmem:[%s2486_s1 + $0x1a0] sm:$0xff] }
 0x196   :  { %v604_v58 = vld [vmem:[#allocation2 + $0xc] sm:$0xff]  ;;  %v1871_v34 = vpack.c.bf16 %v1347_v33, %v1346_v32  ;;  %v1097_v32 = vld [vmem:[%s2487_s2 + $0xa0] sm:$0xff] }
 0x197   :  { %v431_v36 = vld [vmem:[#allocation2 + $0xa] sm:$0xff] }
 0x198   :  { %1586 = vmatmul.mubr.msk.f32.vlgmr.msra.gmra.mrb[0].mxu1 %vm48_vm0, %v431_v36  ;;  %v420_v50 = vld [vmem:[#allocation2 + $0x8] sm:$0xff]  ;;  %v1349_v36 = vld [vmem:[%s2486_s1 + $0x1b8] sm:$0xff] }
 0x199   :  { %1823 = vmatpush3.bf16.msra.mxu1 %v1820_v3  ;;  %1604 = vmatprep.mubr.msk.f32.mxu1 %vm48_vm0, %v419_v39  ;;  %v603_v53 = vld [vmem:[#allocation2 + $0x4] sm:$0xff] }
 0x19a   :  { %1825 = vmatprep.subr.bf16.mxu1 %v1824_v35  ;;  %v1354_v3 = vld [vmem:[%s2486_s1 + $0x1e0] sm:$0xff]  ;;  %v1361_v39 = vld [vmem:[%s2486_s1 + $0x208] sm:$0xff] }
 0x19b   :  { %v1859_v5 = vpack.c.bf16 %v1355_v4, %v1354_v3  ;;  %v1898_v3 = vpack.c.bf16 %v1008_v2, %v1007_v1  ;;  %v1009_v4 = vld [vmem:[%s2487_s2 + $0x40] sm:$0xff]  ;;  %v1098_v33 = vld [vmem:[%s2487_s2 + $0xa8] sm:$0xff] }
 0x19d   :  { %1827 = vmatpush3.bf16.msra.mxu1 %v1824_v35  ;;  %1860 = vmatpush3.bf16.msra.mxu0 %v1859_v5  ;;  %v1348_v35 = vld [vmem:[%s2486_s1 + $0x1b0] sm:$0xff]  ;;  %v1010_v5 = vld [vmem:[%s2487_s2 + $0x48] sm:$0xff] }
 0x19e   :  { %1829 = vmatprep.subr.bf16.mxu1 %v1828_v40  ;;  %1861 = vmatprep.subr.bf16.mxu0 %v1983_v63  ;;  %v1874_v37 = vpack.c.bf16 %v1349_v36, %v1348_v35  ;;  %v1100_v35 = vld [vmem:[%s2487_s2 + $0xb8] sm:$0xff] }
 0x1a1   :  { %1831 = vmatpush3.bf16.msra.mxu1 %v1828_v40  ;;  %1863 = vmatpush3.bf16.msra.mxu0 %v1862_v10  ;;  %v1877_v40 = vpack.c.bf16 %v1361_v39, %v1360_v38  ;;  %v1013_v10 = vld [vmem:[%s2487_s2 + $0x60] sm:$0xff]  ;;  %v1181_v38 = vld [vmem:[%s2487_s2 + $0xc8] sm:$0xff]  ;;  %v1182_v39 = vld [vmem:[%s2487_s2 + $0xd0] sm:$0xff] }
 0x1a2   :  { %1833 = vmatprep.subr.bf16.mxu1 %v1832_v43  ;;  %1864 = vmatprep.subr.bf16.mxu0 %v1983_v63  ;;  %v1928_v42 = vpack.c.bf16 %v1183_v41, %v1182_v39 }
 0x1a5   :  { %1835 = vmatpush3.bf16.msra.mxu1 %v1832_v43 }
 0x1a6   :  { %1837 = vmatprep.subr.bf16.mxu1 %v1836_v46 }
 0x1a8   :  { %1605 = vmatmul.mubr.msk.f32.vlgmr.msra.gmra.mrb[0].mxu1 %vm48_vm0, %v420_v50 }
 0x1a9   :  { %1839 = vmatpush3.bf16.msra.mxu1 %v1836_v46  ;;  %1623 = vmatprep.mubr.msk.f32.mxu1 %vm48_vm0, %v603_v53  ;;  %v1365_v46 = vld [vmem:[%s2486_s1 + $0x228] sm:$0xff]  ;;  %v1001_v53 = vld [vmem:[%s2487_s2] sm:$0xff] }
 0x1aa   :  { %1841 = vmatprep.subr.bf16.mxu1 %v1840_v49  ;;  %v1883_v47 = vpack.c.bf16 %v1365_v46, %v1364_v45  ;;  %v1370_v46 = vld [vmem:[%s2488_s3 + $0x3] ss:$0 sm:$0xff] }
 0x1ad   :  { %1843 = vmatpush3.bf16.msra.mxu1 %v1840_v49  ;;  %v1367_v49 = vld [vmem:[%s2486_s1 + $0x238] sm:$0xff] }
 0x1ae   :  { %1845 = vmatprep.subr.bf16.mxu1 %v1844_v54  ;;  %v1886_v50 = vpack.c.bf16 %v1367_v49, %v1366_v48 }
 0x1b1   :  { %1847 = vmatpush3.bf16.msra.mxu1 %v1844_v54  ;;  %v1002_v54 = vld [vmem:[%s2487_s2 + $0x8] sm:$0xff] }
 0x1b2   :  { %1849 = vmatprep.subr.bf16.mxu1 %v1848_v57 }
 0x1b5   :  { %1851 = vmatpush3.bf16.msra.mxu1 %v1848_v57  ;;  %v1889_v57 = vpack.c.bf16 %v1002_v54, %v1001_v53 }
 0x1b6   :  { %1888 = vmatprep.subr.bf16.mxu1 %v1983_v63 }
 0x1b8   :  { %1624 = vmatmul.mubr.msk.f32.vlgmr.msra.gmra.mrb[0].mxu1 %vm48_vm0, %v604_v58  ;;  %v1004_v58 = vld [vmem:[%s2487_s2 + $0x18] sm:$0xff] }
 0x1b9   :  { %1715 = vmatprep.mubr.msk.f32.mxu1 %vm1984_vm4, %v1982_v61  ;;  %1890 = vmatpush3.bf16.msra.mxu1 %v1889_v57  ;;  %v1892_v59 = vpack.c.bf16 %v1004_v58, %v1003_v55  ;;  %v1373_v58 = vld [vmem:[%s2488_s3 + $0x5] ss:$0 sm:$0xff] }
 0x1ba   :  { %1891 = vmatprep.subr.bf16.mxu1 %v1983_v63 }
 0x1bd   :  { %1893 = vmatpush3.bf16.msra.mxu1 %v1892_v59 }
 0x1be   :  { %1894 = vmatprep.subr.bf16.mxu1 %v1983_v63 }
 0x1c1   :  { %1896 = vmatpush3.bf16.msra.mxu1 %v1895_v0 }
 0x1c2   :  { %1897 = vmatprep.subr.bf16.mxu1 %v1983_v63 }
 0x1c5   :  { %1899 = vmatpush3.bf16.msra.mxu1 %v1898_v3 }
 0x1c6   :  { %1900 = vmatprep.subr.bf16.mxu1 %v1983_v63 }
 0x28b   :  { %v1625_v6 = vpop.f32.mrb[0].mxu1 }
 0x28c   :  { %701 = vrot.lane.b32.xlu1 %v1625_v6, %s1981_s16  ;;  %v686_v9 = vpop.f32.mrb[1].mxu1 }
 0x28d   :  { %699 = vrot.lane.b32.xlu0 %v686_v9, %s1981_s16 }
 0x2fe   :  { %v702_v12 = vpop.permute.xlu1 %701 }
 0x2ff   :  { %v706_v13 = vmax.f32 %v1625_v6, %v702_v12  ;;  %v700_v14 = vpop.permute.xlu0 %699  ;;  %v1901_v6 = vpack.c.bf16 %v1010_v5, %v1009_v4 }
 0x300   :  { %v705_v15 = vmax.f32 %v686_v9, %v700_v14  ;;  %v1904_v9 = vpack.c.bf16 %v1012_v8, %v1011_v7  ;;  %v1016_v14 = vld [vmem:[%s2487_s2 + $0x78] sm:$0xff] }
 0x301   :  { %v713_v16 = vadd.f32 %v1341_v11, %v706_v13  ;;  %1902 = vmatpush3.bf16.msra.mxu1 %v1901_v6  ;;  %v1015_v13 = vld [vmem:[%s2487_s2 + $0x70] sm:$0xff] }
 0x302   :  { %v712_v17 = vadd.f32 %v1341_v11, %v705_v15  ;;  %1903 = vmatprep.subr.bf16.mxu1 %v1983_v63  ;;  %v1014_v11 = vld [vmem:[%s2487_s2 + $0x68] sm:$0xff]  ;;  %v1910_v15 = vpack.c.bf16 %v1016_v14, %v1015_v13 }
 0x303   :  { %v715_v18 = vmax.f32 %v713_v16, 0.0  ;;  %v1907_v12 = vpack.c.bf16 %v1014_v11, %v1013_v10  ;;  %v1369_v16 = vld [vmem:[%s2488_s3 + $0x2] ss:$0 sm:$0xff] }
 0x304   :  { %v714_v19 = vmax.f32 %v712_v17, 0.0 }
 0x305   :  { %v719_v20 = vrot.slane %v715_v18, 2  ;;  %1905 = vmatpush3.bf16.msra.mxu1 %v1904_v9 }
 0x306   :  { %v718_v21 = vrot.slane %v714_v19, 2  ;;  %1906 = vmatprep.subr.bf16.mxu1 %v1983_v63 }
 0x307   :  { %v724_v22 = vmax.f32 %v715_v18, %v719_v20 }
 0x308   :  { %v720_v23 = vsel %vm394_vm2, %v718_v21, %v719_v20 }
 0x309   :  { %727 = vst.msk [vmem:[#allocation3 + $0x6] sm:$0x3] %vm18_vm1, %v724_v22  ;;  %v723_v24 = vmax.f32 %v714_v19, %v720_v23  ;;  %1908 = vmatpush3.bf16.msra.mxu1 %v1907_v12 }
 0x30a   :  { %728 = vst.msk [vmem:[#allocation3 + $0x4] sm:$0x30] %vm411_vm3, %v724_v22  ;;  %1909 = vmatprep.subr.bf16.mxu1 %v1983_v63 }
 0x30b   :  { %725 = vst.msk [vmem:[#allocation3 + $0x2] sm:$0x3] %vm18_vm1, %v723_v24 }
 0x30c   :  { %726 = vst.msk [vmem:[#allocation3] sm:$0x30] %vm411_vm3, %v723_v24  ;;  %v1093_v24 = vld [vmem:[%s2487_s2 + $0x80] sm:$0xff] }
 0x30d   :  { %1911 = vmatpush3.bf16.msra.mxu1 %v1910_v15  ;;  %v1913_v26 = vpack.c.bf16 %v1094_v25, %v1093_v24 }
 0x30e   :  { %1912 = vmatprep.subr.bf16.mxu1 %v1983_v63 }
 0x313   :  { %v739_v30 = vld [vmem:[#allocation3 + $0x2] sm:$0xff] }
 0x314   :  { %1643 = vmatmul.mubr.msk.f32.vlgmr.msra.gmra.mrb[4].mxu0 %vm48_vm0, %v739_v30  ;;  %v729_v43 = vld [vmem:[#allocation3] sm:$0xff] }
 0x315   :  { %1866 = vmatpush3.bf16.msra.mxu0 %v1865_v27  ;;  %1661 = vmatprep.mubr.msk.f32.mxu0 %vm1984_vm4, %v1982_v61  ;;  %v895_v51 = vld [vmem:[#allocation3 + $0x4] sm:$0xff] }
 0x316   :  { %1867 = vmatprep.subr.bf16.mxu0 %v1983_v63 }
 0x319   :  { %1869 = vmatpush3.bf16.msra.mxu0 %v1868_v31  ;;  %v1916_v31 = vpack.c.bf16 %v1096_v29, %v1095_v28 }
 0x31a   :  { %1870 = vmatprep.subr.bf16.mxu0 %v1983_v63 }
 0x31d   :  { %1872 = vmatpush3.bf16.msra.mxu0 %v1871_v34  ;;  %v1919_v34 = vpack.c.bf16 %v1098_v33, %v1097_v32 }
 0x31e   :  { %1873 = vmatprep.subr.bf16.mxu0 %v1983_v63 }
 0x321   :  { %1875 = vmatpush3.bf16.msra.mxu0 %v1874_v37  ;;  %v1180_v37 = vld [vmem:[%s2487_s2 + $0xc0] sm:$0xff] }
 0x322   :  { %1876 = vmatprep.subr.bf16.mxu0 %v1983_v63 }
 0x324   :  { %1662 = vmatmul.mubr.msk.f32.vlgmr.msra.gmra.mrb[4].mxu0 %vm48_vm0, %v729_v43  ;;  %v1184_v43 = vld [vmem:[%s2487_s2 + $0xe0] sm:$0xff] }
 0x325   :  { %1878 = vmatpush3.bf16.msra.mxu0 %v1877_v40  ;;  %1680 = vmatprep.mubr.msk.f32.mxu0 %vm1984_vm4, %v1982_v61  ;;  %v1925_v40 = vpack.c.bf16 %v1181_v38, %v1180_v37 }
 0x326   :  { %1879 = vmatprep.subr.bf16.mxu0 %v1983_v63 }
 0x329   :  { %1881 = vmatpush3.bf16.msra.mxu0 %v1880_v44  ;;  %v1185_v44 = vld [vmem:[%s2487_s2 + $0xe8] sm:$0xff] }
 0x32a   :  { %1882 = vmatprep.subr.bf16.mxu0 %v1983_v63  ;;  %v1931_v45 = vpack.c.bf16 %v1185_v44, %v1184_v43 }
 0x32d   :  { %1884 = vmatpush3.bf16.msra.mxu0 %v1883_v47 }
 0x32e   :  { %1885 = vmatprep.subr.bf16.mxu0 %v1983_v63 }
 0x331   :  { %1887 = vmatpush3.bf16.msra.mxu0 %v1886_v50 }
 0x332   :  { %1924 = vmatprep.subr.bf16.mxu0 %v1983_v63 }
 0x334   :  { %1681 = vmatmul.mubr.msk.f32.vlgmr.msra.gmra.mrb[4].mxu0 %vm48_vm0, %v895_v51  ;;  %v1186_v51 = vld [vmem:[%s2487_s2 + $0xf0] sm:$0xff] }
 0x335   :  { %1753 = vmatprep.mubr.msk.f32.mxu0 %vm1984_vm4, %v1982_v61  ;;  %1926 = vmatpush3.bf16.msra.mxu0 %v1925_v40 }
 0x336   :  { %1927 = vmatprep.subr.bf16.mxu0 %v1983_v63 }
 0x339   :  { %1929 = vmatpush3.bf16.msra.mxu0 %v1928_v42 }
 0x33a   :  { %1930 = vmatprep.subr.bf16.mxu0 %v1983_v63 }
 0x33d   :  { %1932 = vmatpush3.bf16.msra.mxu0 %v1931_v45 }
 0x33e   :  { %1933 = vmatprep.subr.bf16.mxu0 %v1983_v63 }
 0x407   :  { %v974_v52 = vpop.f32.mrb[4].mxu0 }
 0x408   :  { %980 = vrot.lane.b32.xlu0 %v974_v52, %s1981_s16  ;;  %v1682_v56 = vpop.f32.mrb[5].mxu0 }
 0x47a   :  { %v981_v17 = vpop.permute.xlu0 %980 }
 0x47b   :  { %v983_v18 = vmax.f32 %v974_v52, %v981_v17  ;;  %v1187_v52 = vld [vmem:[%s2487_s2 + $0xf8] sm:$0xff] }
 0x47c   :  { %v1934_v53 = vpack.c.bf16 %v1187_v52, %v1186_v51 }
 0x47d   :  { %v989_v19 = vadd.f32 %v1369_v16, %v983_v18 }
 0x47e   :  { %1935 = vmatpush3.bf16.msra.mxu0 %v1934_v53 }
 0x47f   :  { %v990_v20 = vmax.f32 %v989_v19, 0.0 }
 0x481   :  { %v992_v21 = vrot.slane %v990_v20, 2 }
 0x483   :  { %v994_v22 = vmax.f32 %v990_v20, %v992_v21 }
 0x485   :  { %v996_v23 = vrot.slane %v994_v22, 4 }
 0x487   :  { %997 = vrot.lane.b32.xlu1 %v996_v23, %s1981_s16 }
 0x4f9   :  { %v998_v27 = vpop.permute.xlu1 %997 }
 0x4fa   :  { %v1000_v30 = vsel %vm48_vm0, %v994_v22, %v998_v27 }
 0x4fb   :  { %1716 = vmatmul.mubr.f32.vlgmr.msra.gmra.mrb[2].mxu1 %v1000_v30 }
 0x4fc   :  { %1914 = vmatpush3.bf16.msra.mxu1 %v1913_v26  ;;  %1734 = vmatprep.mubr.msk.f32.mxu1 %vm1984_vm4, %v1982_v61  ;;  %v1099_v61 = vld [vmem:[%s2487_s2 + $0xb0] sm:$0xff]  ;;  %s1957_s2 = scalar_lea.vmem %s1275_s21, 32 }
 0x4fd   :  { %1915 = vmatprep.subr.bf16.mxu1 %v1983_v63  ;;  %v1922_v36 = vpack.c.bf16 %v1100_v35, %v1099_v61  ;;  %p1958_p0 = scmp.ne.s32.totalorder %s1275_s21, %s1957_s2  ;;  %p1963_p2 = scmp.lt.s32.totalorder %s1957_s2, %s1957_s2 }
 0x4ff   :  { %p1964_p3 = por %p1963_p2, %p1962_p1 }
 0x500   :  { %1917 = vmatpush3.bf16.msra.mxu1 %v1916_v31 }
 0x501   :  { %1918 = vmatprep.subr.bf16.mxu1 %v1983_v63  ;;  %p1965_p4 = pnand %p1964_p3, %p1958_p0 }
 0x504   :  { %1920 = vmatpush3.bf16.msra.mxu1 %v1919_v34 }
 0x505   :  { %1921 = vmatprep.subr.bf16.mxu1 %v1983_v63  ;;  %v1371_v63 = vld [vmem:[%s2488_s3 + $0x4] ss:$0 sm:$0xff] }
 0x508   :  { %1923 = vmatpush3.bf16.msra.mxu1 %v1922_v36 }
 0x5ce   :  { %v1088_v47 = vpop.f32.mrb[2].mxu1 }
 0x5cf   :  { %v1089_v48 = vadd.f32 %v1370_v46, %v1088_v47  ;;  %v1717_v49 = vpop.f32.mrb[3].mxu1 }
 0x5d1   :  { %v1092_v50 = vmax.f32 %v1089_v48, 0.0 }
 0x5d3   :  { %1735 = vmatmul.mubr.msk.f32.vlgmr.msra.gmra.mrb[4].mxu1 %vm48_vm0, %v1092_v50 }
 0x6a6   :  { %v1175_v54 = vpop.f32.mrb[4].mxu1 }
 0x6a7   :  { %v1176_v55 = vadd.f32 %v1371_v63, %v1175_v54  ;;  %v1736_v56 = vpop.f32.mrb[5].mxu1 }
 0x6a9   :  { %v1179_v57 = vmax.f32 %v1176_v55, 0.0 }
 0x6ab   :  { %1754 = vmatmul.mubr.msk.f32.vlgmr.msra.gmra.mrb[6].mxu0 %vm48_vm0, %v1179_v57 }
 0x77e   :  { %v1262_v59 = vpop.f32.mrb[6].mxu0 }
 0x77f   :  { %v1263_v60 = vadd.f32 %v1373_v58, %v1262_v59  ;;  %v1755_v62 = vpop.f32.mrb[7].mxu0 }
 0x781   :  { %1267 = vst.msk [vmem:[#allocation4] sm:$0x3] %vm1266_vm5, %v1263_v60 }
 0x782   :  { %1968 = shalt.err (!%p1965_p4)
}
 0x783   :  { %s1969_s24 = scalar_lea.hbm %s2489_s4, 32 }
 0x784   :  { %p1970_p5 = scmp.ne.s32.totalorder %s2489_s4, %s1969_s24  ;;  %p1973_p6 = scmp.lt.u32.totalorder %s1969_s24, %s2489_s4 }
 0x786   :  { %p1975_p7 = pnand %p1973_p6, %p1970_p5 }
 0x788   :  { %1978 = shalt.err (!%p1975_p7)
}
 0x789   :  { %1277 = dma.vmem_to_hbm [thread:$0]  %s1275_s21, 32, %s2489_s4, [#allocation5]  }
 0x78a   :  { %1979 = dma.done.wait [#allocation5], 32  }
 0x78b   :  { %1980 = vsyncadd [#allocation5], 4294967264 }
 0x78c   :  { %1281 = vsyncpa [#allocation5], 1 }

</bundles_post_ra>
